<compile_context>
chip_gen: v7x
topology: tpu7x:2x2x1
jax: 0.10.0
libtpu: 0.0.40
codegen_flags: <defaults>
</compile_context>

<pallas_src>
import jax
import jax.numpy as jnp
from jax.experimental import pallas as pl
from jax.experimental.pallas import tpu as pltpu


def _exp_pool_kernel(m_ref, x_ref, o_ref):
    # m_ref: (1, 1) f32 parameter in SMEM
    # x_ref: (TB, C, TL) block in VMEM
    # o_ref: (TB, TL)    block in VMEM
    x = x_ref[...].astype(jnp.float32)                  # (TB, C, TL)
    m = m_ref[0, 0]

    mean = jnp.mean(x, axis=1, keepdims=True)           # (TB, 1, TL) sublane reduce
    d = (x - mean) * m                                  # now_diff * m
    # Stability shift: dmax >= 0 per (b, l) column and cancels in the
    # normalisation below, so this is exactly equivalent to the reference.
    dmax = jnp.max(d, axis=1, keepdims=True)            # (TB, 1, TL)
    e = jnp.exp(d - dmax)                               # EUP, never overflows

    # Reference weight: (sign(d)*exp(d) + exp(d)) / 2
    #   == exp(d) if d > 0, 0.5 if d == 0, 0 if d < 0
    # Shifted version (same after normalisation): e, 0.5*e, 0.
    w = jnp.where(d > 0, e, jnp.where(d == 0, 0.5 * e, 0.0))

    # sum(x * w / S) == sum(x * w) / S  -> fold normalisation out of the
    # elementwise path; den >= 0.5 always (the max element contributes e=1).
    num = jnp.sum(x * w, axis=1)                         # (TB, TL)
    den = jnp.sum(w, axis=1)                             # (TB, TL)
    o_ref[...] = (num / den).astype(o_ref.dtype)


def _round_up(x, n):
    return -(-x // n) * n


def _choose_tiles(B, C, L, itemsize):
    """Pick (tb, tl, vmem_limit_bytes) sized in bytes for the current chip."""
    try:
        vmem_cap = int(pltpu.get_tpu_info().vmem_capacity_bytes)
    except Exception:
        vmem_cap = 64 * 1024 * 1024   # conservative (v7x per-TensorCore VMEM)

    # Working set is roughly: 2x double-buffered x block + ~3x (TB,C,TL) f32
    # elementwise temporaries + (small) output buffers  =>  keep the x block at
    # <= ~1/6 of ~70% of VMEM, targeting 2-4 MiB blocks.
    budget = min(4 << 20, max(512 << 10, (vmem_cap * 7 // 10) // 6))

    row_bytes = max(1, C * itemsize)

    # Guard: the design requires the full C extent in one VMEM block.
    min_tb = 8 if B >= 8 else B
    min_tl = 128 if L > 128 else L
    if 6 * min_tb * row_bytes * min_tl > vmem_cap:
        # TODO(synk): add a C-chunked two-pass / emit_pipeline reduction for
        # very large C instead of requiring full C in a single block.
        raise ValueError(
            f"GlobalExpectationPooling kernel: C={C} too large for a full-C "
            f"VMEM block on this chip (VMEM={vmem_cap} bytes).")

    # --- length tile: grow toward full L first (contiguous HBM runs) --------
    if L <= 128:
        tl = L
    else:
        tl_cap = _round_up(L, 128)
        tl_budget = budget // (min_tb * row_bytes)
        tl = max(128, min(tl_cap, (tl_budget // 128) * 128))

    # --- batch tile: fill the remaining budget, multiples of 8 --------------
    if B <= 8:
        tb = B
    else:
        tb_budget = budget // (row_bytes * tl)
        tb = max(8, min(_round_up(B, 8), (tb_budget // 8) * 8))
        if tb >= B:
            tb = B

    # --- ensure >=2 blocks on a "parallel" axis (v7x has 2 TensorCores) -----
    if pl.cdiv(B, tb) * pl.cdiv(L, tl) == 1:
        if L >= 256:
            tl = max(128, _round_up(L // 2, 128))
            if tl >= L:
                tl = max(128, tl - 128)
        elif B >= 16:
            tb = max(8, _round_up(B // 2, 8))
            if tb >= B:
                tb = max(8, tb - 8)

    block_bytes = tb * C * tl * itemsize
    vmem_limit = int(min(int(vmem_cap * 0.85), max(32 << 20, 8 * block_bytes)))
    return tb, tl, vmem_limit


def global_expectation_pooling(x, m):
    """x: (B, C, L) float (f32 or bf16), m: (1, 1) float32. Returns (B, L)."""
    B, C, L = x.shape
    itemsize = jnp.dtype(x.dtype).itemsize
    tb, tl, vmem_limit = _choose_tiles(B, C, L, itemsize)

    grid = (pl.cdiv(B, tb), pl.cdiv(L, tl))

    cost = pl.CostEstimate(
        flops=10 * B * C * L,
        transcendentals=B * C * L,
        bytes_accessed=itemsize * B * C * L + itemsize * B * L + 4,
    )

    return pl.pallas_call(
        _exp_pool_kernel,
        out_shape=jax.ShapeDtypeStruct((B, L), x.dtype),
        grid_spec=pltpu.PrefetchScalarGridSpec(
            num_scalar_prefetch=0,
            grid=grid,
            in_specs=[
                # m: whole (1, 1) scalar parameter, lives in SMEM.
                pl.BlockSpec(memory_space=pltpu.MemorySpace.SMEM),
                # x: (tb, C, tl) tile; full C so the reduction never tiles.
                pl.BlockSpec((tb, C, tl), lambda i, j: (i, 0, j)),
            ],
            out_specs=pl.BlockSpec((tb, tl), lambda i, j: (i, j)),
        ),
        compiler_params=pltpu.CompilerParams(
            dimension_semantics=("parallel", "parallel"),
            vmem_limit_bytes=vmem_limit,
        ),
        cost_estimate=cost,
    )(m, x)


def _reference(x, m):
    # Pure-JAX transcription of the PyTorch forward (correctness check).
    now = jnp.swapaxes(x, -1, -2).astype(jnp.float32)             # (B, L, C)
    now_diff = now - jnp.mean(now, axis=-1, keepdims=True)
    now_diff_m = now_diff * m[0, 0]
    e = jnp.exp(now_diff_m)
    diff_2 = jnp.sign(now_diff_m) * e + e
    diff_now = diff_2 / 2
    prob = diff_now / jnp.sum(diff_now, axis=-1, keepdims=True)
    return jnp.sum(now * prob, axis=-1)                           # (B, L)


if __name__ == "__main__":
    # Deterministic parameter init, matching nn.Parameter(torch.tensor([[1.0]])).
    m = jnp.array([[1.0]], dtype=jnp.float32)

    # Small sanity shape (module convention: N, C, L).
    key = jax.random.PRNGKey(0)
    B, C, L = 2, 4, 16
    x = jax.random.normal(key, (B, C, L), dtype=jnp.float32)

    out = jax.block_until_ready(global_expectation_pooling(x, m))
    ref = _reference(x, m)
    assert out.shape == (B, L)
    assert jnp.allclose(out, ref, atol=1e-4, rtol=1e-4)

    # Second shape exercising the tiled / multi-block path
    # (tb=16, tl split to 256 -> grid=(1, 2)).
    B2, C2, L2 = 16, 8, 512
    x2 = jax.random.normal(jax.random.PRNGKey(0), (B2, C2, L2), dtype=jnp.float32)
    out2 = jax.block_until_ready(global_expectation_pooling(x2, m))
    ref2 = _reference(x2, m)
    assert out2.shape == (B2, L2)
    assert jnp.allclose(out2, ref2, atol=1e-4, rtol=1e-4)

    print("KERNEL_OK")
</pallas_src>

<mosaic_0001>
module attributes {stable_mosaic.version = 11 : i64} {
  func.func @_exp_pool_kernel(%arg0: i32, %arg1: i32, %arg2: memref<1x1xf32, #tpu.memory_space<smem>>, %arg3: memref<2x4x16xf32, #tpu.memory_space<vmem>>, %arg4: memref<2x16xf32, #tpu.memory_space<vmem>>) attributes {dimension_semantics = [#tpu.dimension_semantics<parallel>, #tpu.dimension_semantics<parallel>], iteration_bounds = array<i64: 1, 1>, scalar_prefetch = 0 : i64, scratch_operands = 0 : i64, tpu.core_type = #tpu.core_type<tc>, window_params = [{transform_indices = @transform_0, window_bounds = array<i64: 1, 1>}, {transform_indices = @transform_1, window_bounds = array<i64: 2, 4, 16>}, {transform_indices = @transform_2, window_bounds = array<i64: 2, 16>}]} {
    %c0 = arith.constant 0 : index
    %c0_0 = arith.constant 0 : index
    %c0_1 = arith.constant 0 : index
    %0 = vector.load %arg3[%c0, %c0_0, %c0_1] : memref<2x4x16xf32, #tpu.memory_space<vmem>>, vector<2x4x16xf32>
    %c0_2 = arith.constant 0 : index
    %c0_3 = arith.constant 0 : index
    %1 = memref.load %arg2[%c0_2, %c0_3] : memref<1x1xf32, #tpu.memory_space<smem>>
    %cst = arith.constant dense<0.000000e+00> : vector<2x16xf32>
    %2 = vector.multi_reduction <add>, %0, %cst [1] : vector<2x4x16xf32> to vector<2x16xf32>
    %3 = vector.shape_cast %2 : vector<2x16xf32> to vector<2x1x16xf32>
    %cst_4 = arith.constant 4.000000e+00 : f32
    %4 = vector.broadcast %cst_4 : f32 to vector<2x1x16xf32>
    %5 = arith.divf %3, %4 : vector<2x1x16xf32>
    %6 = vector.broadcast %5 : vector<2x1x16xf32> to vector<2x4x16xf32>
    %7 = arith.subf %0, %6 : vector<2x4x16xf32>
    %8 = vector.broadcast %1 : f32 to vector<2x4x16xf32>
    %9 = arith.mulf %7, %8 : vector<2x4x16xf32>
    %cst_5 = arith.constant dense<0xFF800000> : vector<2x16xf32>
    %10 = vector.multi_reduction <maximumf>, %9, %cst_5 [1] : vector<2x4x16xf32> to vector<2x16xf32>
    %11 = vector.shape_cast %10 : vector<2x16xf32> to vector<2x1x16xf32>
    %12 = vector.broadcast %11 : vector<2x1x16xf32> to vector<2x4x16xf32>
    %13 = arith.subf %9, %12 : vector<2x4x16xf32>
    %14 = math.exp %13 : vector<2x4x16xf32>
    %cst_6 = arith.constant 0.000000e+00 : f32
    %15 = vector.broadcast %cst_6 : f32 to vector<2x4x16xf32>
    %16 = arith.cmpf ogt, %9, %15 : vector<2x4x16xf32>
    %cst_7 = arith.constant 0.000000e+00 : f32
    %17 = vector.broadcast %cst_7 : f32 to vector<2x4x16xf32>
    %18 = arith.cmpf oeq, %9, %17 : vector<2x4x16xf32>
    %cst_8 = arith.constant 5.000000e-01 : f32
    %19 = vector.broadcast %cst_8 : f32 to vector<2x4x16xf32>
    %20 = arith.mulf %19, %14 : vector<2x4x16xf32>
    %cst_9 = arith.constant 0.000000e+00 : f32
    %21 = vector.broadcast %cst_9 : f32 to vector<2x4x16xf32>
    %22 = arith.select %18, %20, %21 : vector<2x4x16xi1>, vector<2x4x16xf32>
    %23 = arith.select %16, %14, %22 : vector<2x4x16xi1>, vector<2x4x16xf32>
    %24 = arith.mulf %0, %23 : vector<2x4x16xf32>
    %cst_10 = arith.constant dense<0.000000e+00> : vector<2x16xf32>
    %25 = vector.multi_reduction <add>, %24, %cst_10 [1] : vector<2x4x16xf32> to vector<2x16xf32>
    %cst_11 = arith.constant dense<0.000000e+00> : vector<2x16xf32>
    %26 = vector.multi_reduction <add>, %23, %cst_11 [1] : vector<2x4x16xf32> to vector<2x16xf32>
    %27 = arith.divf %25, %26 : vector<2x16xf32>
    %c0_12 = arith.constant 0 : index
    %c0_13 = arith.constant 0 : index
    %28 = vector.load %arg4[%c0_12, %c0_13] : memref<2x16xf32, #tpu.memory_space<vmem>>, vector<2x16xf32>
    tpu.vector_store %arg4[%c0_12, %c0_13], %27 {strides = array<i32>} : memref<2x16xf32, #tpu.memory_space<vmem>>, vector<2x16xf32>,
    return
  }
  func.func @transform_0(%arg0: i32, %arg1: i32) -> (i32, i32) {
    %c0_i32 = arith.constant 0 : i32
    %c0_i32_0 = arith.constant 0 : i32
    %c0_i32_1 = arith.constant 0 : i32
    return %c0_i32, %c0_i32_0 : i32, i32
  }
  func.func @transform_1(%arg0: i32, %arg1: i32) -> (i32, i32, i32) {
    %c0_i32 = arith.constant 0 : i32
    %c0_i32_0 = arith.constant 0 : i32
    return %arg0, %c0_i32, %arg1 : i32, i32, i32
  }
  func.func @transform_2(%arg0: i32, %arg1: i32) -> (i32, i32) {
    %c0_i32 = arith.constant 0 : i32
    return %arg0, %arg1 : i32, i32
  }
}

</mosaic_0001>

<bundles_post_ra>
// kernel: tpu_custom_call.1
= control target key start
LH: loop header
LB: loop body
LE: loop exit
PB: predicated region body
PF: predicated region fallthrough
CT: control target
= control target key end

     0   :  { %8 = vsyncpa [#allocation4], 0  ;;  %s253_s0 = inlined_call_operand.<no memory space> [shape: f32[1,1], index: 0, kind: input, shape index: {}]   ;;  %s254_s1 = inlined_call_operand.hbm [shape: f32[2,4,16], index: 1, kind: input, shape index: {}]   ;;  %s255_s2 = inlined_call_operand.hbm [shape: f32[2,16], index: 2, kind: output, shape index: {}]  }
   0x1   :  { %9 = vsyncpa [#allocation5], 0  ;;  %s199_s9 = smov [#allocation3]   ;;  %s151_s13 = scalar_lea.hbm %s254_s1, 128 }
   0x2   :  { %s17_s10 = sshll.u32 %s199_s9, 4  ;;  %p152_p0 = scmp.ne.s32.totalorder %s254_s1, %s151_s13  ;;  %s18_s10 = int_to_ptr.vmem [resolvable:$true] %s17_s10 }
   0x3   :  { %p155_p1 = scmp.lt.u32.totalorder %s151_s13, %s254_s1 }
   0x5   :  { %p157_p2 = pnand %p155_p1, %p152_p0 }
   0x7   :  { %160 = shalt.err (!%p157_p2)
}
   0x8   :  { %s161_s18 = scalar_lea.vmem %s18_s10, 128  ;;  %p166_p4 = scmp.lt.s32.totalorder %s18_s10, %s18_s10 }
   0x9   :  { %p162_p3 = scmp.ne.s32.totalorder %s18_s10, %s161_s18  ;;  %p167_p5 = scmp.lt.s32.totalorder %s161_s18, %s161_s18 }
   0xb   :  { %p168_p6 = por %p167_p5, %p166_p4 }
   0xd   :  { %p169_p7 = pnand %p168_p6, %p162_p3 }
   0xf   :  { %172 = shalt.err (!%p169_p7)
}
  0x10   :  { %s200_s19 = smov 64   ;;  %s201_s20 = smov 4  }
  0x11   :  { %23 = dma.hbm_to_vmem [thread:$0]  %s254_s1, 128, %s18_s10, [#allocation4], %s200_s19, %s200_s19, %s201_s20  }
  0x12   :  { %195 = dma.done.wait [#allocation4], 128  }
  0x13   :  { %196 = vsyncadd [#allocation4], 4294967168  ;;  %vm30_vm0 = vcmask 125952   ;;  %v27_v0 = vld [vmem:[#allocation3] sm:$0xf]  ;;  %v50_v18 = vstv %s253_s0  ;;  %s202_s0 = smov [#allocation6]  }
  0x14   :  { %v28_v1 = vld [vmem:[#allocation3 + $0x4] sm:$0xf]  ;;  %v31_v2 = vsel %vm30_vm0, %v27_v0, 0.0  ;;  %s130_s24 = sshll.u32 %s202_s0, 4  ;;  %vm119_vm5 = vcmask 1041409   ;;  %vm122_vm6 = vcmask 123904   ;;  %s131_s24 = int_to_ptr.vmem [resolvable:$true] %s130_s24 }
  0x15   :  { %v38_v3 = vsel %vm30_vm0, %v28_v1, 0.0  ;;  %v32_v4 = vrot.slane %v31_v2, 4  ;;  %s173_s25 = scalar_lea.vmem %s131_s24, 32  ;;  %p178_p9 = scmp.lt.s32.totalorder %s131_s24, %s131_s24 }
  0x16   :  { %v39_v5 = vrot.slane %v38_v3, 4  ;;  %p174_p8 = scmp.ne.s32.totalorder %s131_s24, %s173_s25  ;;  %p179_p10 = scmp.lt.s32.totalorder %s173_s25, %s173_s25 }
  0x17   :  { %v33_v6 = vadd.f32 %v32_v4, %v31_v2 }
  0x18   :  { %v40_v7 = vadd.f32 %v39_v5, %v38_v3  ;;  %p180_p11 = por %p179_p10, %p178_p9 }
  0x19   :  { %v34_v8 = vrot.slane %v33_v6, 2 }
  0x1a   :  { %v41_v9 = vrot.slane %v40_v7, 2  ;;  %p181_p12 = pnand %p180_p11, %p174_p8 }
  0x1b   :  { %v35_v10 = vadd.f32 %v34_v8, %v33_v6 }
  0x1c   :  { %v42_v11 = vadd.f32 %v41_v9, %v40_v7 }
  0x1d   :  { %v36_v12 = vrot.slane %v35_v10, 1 }
  0x1e   :  { %v43_v13 = vrot.slane %v42_v11, 1 }
  0x1f   :  { %v37_v14 = vadd.f32 %v36_v12, %v35_v10 }
  0x20   :  { %v44_v15 = vadd.f32 %v43_v13, %v42_v11 }
  0x21   :  { %v46_v16 = vmul.f32 0.25, %v37_v14 }
  0x22   :  { %v47_v17 = vmul.f32 0.25, %v44_v15 }
  0x23   :  { %v48_v19 = vsub.f32 %v27_v0, %v46_v16 }
  0x24   :  { %v49_v20 = vsub.f32 %v28_v1, %v47_v17 }
  0x25   :  { %v51_v21 = vmul.f32 %v50_v18, %v48_v19 }
  0x26   :  { %v52_v22 = vmul.f32 %v50_v18, %v49_v20 }
  0x27   :  { %v53_v23 = vsel %vm30_vm0, %v51_v21, -inf  ;;  %vm75_vm1 = vcmp.eq.f32.partialorder %v51_v21, 0.0  ;;  %vm73_vm2 = vcmp.gt.f32.partialorder %v51_v21, 0.0 }
  0x28   :  { %v60_v24 = vsel %vm30_vm0, %v52_v22, -inf  ;;  %v54_v25 = vrot.slane %v53_v23, 4  ;;  %vm76_vm3 = vcmp.eq.f32.partialorder %v52_v22, 0.0  ;;  %vm74_vm4 = vcmp.gt.f32.partialorder %v52_v22, 0.0 }
  0x29   :  { %v61_v26 = vrot.slane %v60_v24, 4 }
  0x2a   :  { %v55_v27 = vmax.f32 %v53_v23, %v54_v25 }
  0x2b   :  { %v62_v28 = vmax.f32 %v60_v24, %v61_v26 }
  0x2c   :  { %v56_v29 = vrot.slane %v55_v27, 2 }
  0x2d   :  { %v63_v30 = vrot.slane %v62_v28, 2 }
  0x2e   :  { %v57_v31 = vmax.f32 %v55_v27, %v56_v29 }
  0x2f   :  { %v64_v32 = vmax.f32 %v62_v28, %v63_v30 }
  0x30   :  { %v58_v33 = vrot.slane %v57_v31, 1 }
  0x31   :  { %v65_v34 = vrot.slane %v64_v32, 1 }
  0x32   :  { %v59_v35 = vmax.f32 %v57_v31, %v58_v33 }
  0x33   :  { %v66_v36 = vmax.f32 %v64_v32, %v65_v34 }
  0x34   :  { %v67_v37 = vsub.f32 %v51_v21, %v59_v35 }
  0x35   :  { %v68_v38 = vsub.f32 %v52_v22, %v66_v36 }
  0x36   :  { %v69_v39 = vmul.f32 1.442695, %v67_v37 }
  0x37   :  { %v71_v40 = vmul.f32 1.442695, %v68_v38 }
  0x38   :  { %143 = vpow2.f32 %v69_v39 }
  0x39   :  { %145 = vpow2.f32 %v71_v40 }
  0x42   :  { %v144_v41 = vpop.eup %143 }
  0x43   :  { %v146_v42 = vpop.eup %145  ;;  %v77_v43 = vmul.f32 0.5, %v144_v41 }
  0x44   :  { %v78_v44 = vmul.f32 0.5, %v146_v42 }
  0x45   :  { %v79_v45 = vsel %vm75_vm1, %v77_v43, 0.0 }
  0x46   :  { %v80_v46 = vsel %vm76_vm3, %v78_v44, 0.0  ;;  %v81_v47 = vsel %vm73_vm2, %v144_v41, %v79_v45 }
  0x47   :  { %v82_v48 = vsel %vm74_vm4, %v146_v42, %v80_v46  ;;  %v83_v49 = vmul.f32 %v81_v47, %v27_v0  ;;  %v99_v50 = vsel %vm30_vm0, %v81_v47, 0.0 }
  0x48   :  { %v84_v51 = vmul.f32 %v82_v48, %v28_v1  ;;  %v100_v52 = vrot.slane %v99_v50, 4  ;;  %v106_v53 = vsel %vm30_vm0, %v82_v48, 0.0 }
  0x49   :  { %v85_v54 = vsel %vm30_vm0, %v83_v49, 0.0  ;;  %v107_v55 = vrot.slane %v106_v53, 4 }
  0x4a   :  { %v86_v56 = vrot.slane %v85_v54, 4  ;;  %v92_v57 = vsel %vm30_vm0, %v84_v51, 0.0  ;;  %v101_v58 = vadd.f32 %v100_v52, %v99_v50 }
  0x4b   :  { %v93_v59 = vrot.slane %v92_v57, 4  ;;  %v108_v60 = vadd.f32 %v107_v55, %v106_v53 }
  0x4c   :  { %v87_v61 = vadd.f32 %v86_v56, %v85_v54  ;;  %v102_v62 = vrot.slane %v101_v58, 2 }
  0x4d   :  { %v94_v63 = vadd.f32 %v93_v59, %v92_v57  ;;  %v109_v2 = vrot.slane %v108_v60, 2 }
  0x4e   :  { %v103_v0 = vadd.f32 %v102_v62, %v101_v58  ;;  %v88_v3 = vrot.slane %v87_v61, 2 }
  0x4f   :  { %v110_v4 = vadd.f32 %v109_v2, %v108_v60  ;;  %v95_v1 = vrot.slane %v94_v63, 2 }
  0x50   :  { %v104_v5 = vrot.slane %v103_v0, 1  ;;  %v89_v8 = vadd.f32 %v88_v3, %v87_v61 }
  0x51   :  { %v111_v6 = vrot.slane %v110_v4, 1  ;;  %v96_v10 = vadd.f32 %v95_v1, %v94_v63 }
  0x52   :  { %v105_v7 = vadd.f32 %v104_v5, %v103_v0  ;;  %v90_v11 = vrot.slane %v89_v8, 1 }
  0x53   :  { %v112_v9 = vadd.f32 %v111_v6, %v110_v4  ;;  %v97_v12 = vrot.slane %v96_v10, 1 }
  0x54   :  { %147 = vrcp.f32 %v105_v7  ;;  %v91_v13 = vadd.f32 %v90_v11, %v89_v8 }
  0x55   :  { %149 = vrcp.f32 %v112_v9  ;;  %v98_v14 = vadd.f32 %v97_v12, %v96_v10 }
  0x5e   :  { %v148_v15 = vpop.eup %147 }
  0x5f   :  { %v150_v16 = vpop.eup %149  ;;  %v114_v17 = vmul.f32 %v148_v15, %v91_v13 }
  0x60   :  { %v116_v18 = vmul.f32 %v150_v16, %v98_v14 }
  0x62   :  { %v120_v19 = vsel %vm119_vm5, %v116_v18, %v114_v17 }
  0x63   :  { %123 = vst.msk [vmem:[#allocation6] sm:$0x3] %vm122_vm6, %v120_v19 }
  0x64   :  { %184 = shalt.err (!%p181_p12)
}
  0x65   :  { %s185_s28 = scalar_lea.hbm %s255_s2, 32 }
  0x66   :  { %p186_p13 = scmp.ne.s32.totalorder %s255_s2, %s185_s28  ;;  %p189_p0 = scmp.lt.u32.totalorder %s185_s28, %s255_s2 }
  0x68   :  { %p191_p1 = pnand %p189_p0, %p186_p13 }
  0x6a   :  { %194 = shalt.err (!%p191_p1)
}
  0x6b   :  { %133 = dma.vmem_to_hbm [thread:$0]  %s131_s24, 32, %s255_s2, [#allocation5]  }
  0x6c   :  { %197 = dma.done.wait [#allocation5], 32  }
  0x6d   :  { %198 = vsyncadd [#allocation5], 4294967264 }
  0x6e   :  { %137 = vsyncpa [#allocation4], 1 }
  0x6f   :  { %138 = vsyncpa [#allocation5], 1 }

</bundles_post_ra>
